<compile_context>
chip_gen: v5e
topology: v5e:2x2
jax: 0.10.0
libtpu: 0.0.40
codegen_flags: <defaults>
</compile_context>

<pallas_src>
import functools
import re

import jax
import jax.numpy as jnp
from jax.experimental import pallas as pl
from jax.experimental.pallas import tpu as pltpu


def _scale_exp_kernel(scale_ref, x_ref, o_ref, *, compute_dtype):
    # scale_ref: shape-(1,) f32 in SMEM (scalar prefetch).
    # x_ref / o_ref: (block_rows, W) VMEM tiles in the caller's dtype.
    # Splat scale to a (1,1) f32 vector first, then convert: every op stays a
    # well-supported vector op (no scalar f32->bf16 conversion on the scalar
    # core).  compute_dtype is f32 on v5e (no bf16 VPU/EUP) and bf16-native on
    # v6e/v7x for bf16 inputs; for f32 inputs the astypes are no-ops.
    s = jnp.full((1, 1), scale_ref[0], dtype=jnp.float32).astype(compute_dtype)
    x = x_ref[...].astype(compute_dtype)
    o_ref[...] = jnp.exp(x * s).astype(o_ref.dtype)


@functools.lru_cache(maxsize=1)
def _tpu_generation() -> int:
    """Best-effort TPU generation number (0 if unknown -> conservative paths)."""
    try:
        kind = jax.devices()[0].device_kind.lower()
    except Exception:
        return 0
    m = re.search(r"v(\d+)", kind)
    return int(m.group(1)) if m else 0


def _pick_block_rows(rows: int, W: int, itemsize: int, target_block_bytes: int) -> int:
    # Packed-sublane row alignment: 8 (f32), 16 (bf16/f16), 32 (int8/fp8).
    row_align = 8 * max(1, 4 // itemsize)
    br = (target_block_bytes // (W * itemsize)) // row_align * row_align
    br = max(row_align, br)
    if br >= rows:
        # Whole array fits in one target-sized block.  If rows allow an aligned
        # split, emit >= 2 grid steps so both v7x TensorCores get work; a
        # full-extent block dim is always legal otherwise.
        if rows >= 2 * row_align:
            br = pl.cdiv(pl.cdiv(rows, 2), row_align) * row_align
            if br >= rows:
                br = rows
        else:
            br = rows
    elif rows % br:
        # Prefer a nearby divisor of rows (no masked partial last block);
        # bounded search keeps trace-time work trivial.
        lo = max(row_align, br - 8 * row_align)
        for cand in range(br, lo - 1, -row_align):
            if rows % cand == 0:
                br = cand
                break
    return br


def _scale_exp_2d(x2d: jax.Array, scale_f32: jax.Array, target_block_bytes) -> jax.Array:
    rows, W = x2d.shape
    dtype = x2d.dtype
    itemsize = jnp.dtype(dtype).itemsize
    gen = _tpu_generation()

    if target_block_bytes is None:
        # 4 MiB blocks (16 MiB live) fit v6e/v7x's 32 MiB scoped-VMEM default;
        # cap at 2 MiB (8 MiB live) on v5e's 16 MiB default / unknown chips.
        target_block_bytes = (4 << 20) if gen >= 6 else (2 << 20)

    br = _pick_block_rows(rows, W, itemsize, target_block_bytes)
    grid = (pl.cdiv(rows, br),)   # ragged last block is masked by Pallas

    # bf16-native math only where the VPU/EUP support it (v6e/v7x); otherwise
    # cast up to f32 in-register (HBM traffic stays in the caller's dtype).
    compute_dtype = dtype if (dtype == jnp.bfloat16 and gen >= 6) else jnp.float32

    n = rows * W
    kernel = functools.partial(_scale_exp_kernel, compute_dtype=compute_dtype)

    return pl.pallas_call(
        kernel,
        out_shape=jax.ShapeDtypeStruct((rows, W), dtype),
        grid_spec=pltpu.PrefetchScalarGridSpec(
            num_scalar_prefetch=1,      # scale -> SMEM once, before the grid
            grid=grid,
            in_specs=[pl.BlockSpec((br, W), lambda i, s: (i, 0))],
            out_specs=pl.BlockSpec((br, W), lambda i, s: (i, 0)),
        ),
        compiler_params=pltpu.CompilerParams(
            # 'parallel' lets the 1-D grid shard across both TensorCores on
            # v7x (grid has >= 2 steps whenever rows allow); neutral on v5e/v6e.
            dimension_semantics=("parallel",),
        ),
        cost_estimate=pl.CostEstimate(
            flops=n, transcendentals=n, bytes_accessed=2 * n * itemsize),
    )(scale_f32, x2d)


def scale_exp(x: jax.Array, scale: jax.Array, *, target_block_bytes=None) -> jax.Array:
    """exp(x * scale). `scale` is a shape-(1,) f32 parameter (as in the nn.Module)."""
    orig_shape = x.shape
    dtype = x.dtype
    n = x.size
    scale_f32 = jnp.asarray(scale, jnp.float32).reshape(-1)   # shape (1,)

    if n == 0:
        return jnp.exp(x.astype(jnp.float32) * scale_f32[0]).astype(dtype)

    flat = x.reshape(-1)   # reshape of contiguous data is free

    # Widest lane-dense width W (multiple of 128) that divides n -> no pad copy.
    W = None
    for cand in (1024, 512, 256, 128):
        if n % cand == 0:
            W = cand
            break

    if W is None:
        # Rare ragged case: kernel on the 128-aligned prefix, <128-element tail
        # in plain jnp (no full-array pad + slice round trips).
        W = 128
        n_main = (n // W) * W
        tail = jnp.exp(flat[n_main:].astype(jnp.float32) * scale_f32[0]).astype(dtype)
        if n_main == 0:
            return tail.reshape(orig_shape)
        main = _scale_exp_2d(flat[:n_main].reshape(n_main // W, W), scale_f32,
                             target_block_bytes)
        return jnp.concatenate([main.reshape(-1), tail]).reshape(orig_shape)

    rows = n // W
    out2d = _scale_exp_2d(flat.reshape(rows, W), scale_f32, target_block_bytes)
    return out2d.reshape(orig_shape)


if __name__ == "__main__":
    key = jax.random.PRNGKey(0)
    # NCHW input like the PyTorch module would receive from a conv head.
    x = jax.random.normal(key, (2, 4, 16, 16), dtype=jnp.float32)

    # Parameter init exactly as in ScaleExp.__init__(init_value=1.0)
    init_value = 1.0
    scale = jnp.array([init_value], dtype=jnp.float32)

    out = jax.block_until_ready(scale_exp(x, scale))

    # Correctness check against the reference semantics: exp(x * scale)
    ref = jnp.exp(x * scale[0])
    assert out.shape == x.shape and out.dtype == x.dtype
    assert jnp.allclose(out, ref, rtol=1e-6, atol=1e-6)

    # bf16 path: bf16 over HBM; bf16-native math on v6e/v7x, f32 math on v5e.
    x_bf16 = x.astype(jnp.bfloat16)
    out_bf16 = jax.block_until_ready(scale_exp(x_bf16, scale))
    ref_bf16 = jnp.exp(x_bf16.astype(jnp.float32) * scale[0]).astype(jnp.bfloat16)
    assert out_bf16.dtype == jnp.bfloat16
    assert jnp.allclose(out_bf16.astype(jnp.float32), ref_bf16.astype(jnp.float32),
                        rtol=2e-2, atol=2e-2)

    # Ragged size (n % 128 != 0): aligned prefix through the kernel, tail in jnp.
    x_ragged = jax.random.normal(jax.random.PRNGKey(1), (17, 31), dtype=jnp.float32)
    out_ragged = jax.block_until_ready(scale_exp(x_ragged, scale))
    assert jnp.allclose(out_ragged, jnp.exp(x_ragged * scale[0]), rtol=1e-6, atol=1e-6)

    print("KERNEL_OK")
</pallas_src>

<mosaic_0001>
module attributes {stable_mosaic.version = 11 : i64} {
  func.func @_scale_exp_kernel(%arg0: i32, %arg1: memref<1xf32, #tpu.memory_space<smem>>, %arg2: memref<2x1024xf32, #tpu.memory_space<vmem>>, %arg3: memref<2x1024xf32, #tpu.memory_space<vmem>>) attributes {dimension_semantics = [#tpu.dimension_semantics<parallel>], iteration_bounds = array<i64: 1>, scalar_prefetch = 1 : i64, scratch_operands = 0 : i64, tpu.core_type = #tpu.core_type<tc>, window_params = [{transform_indices = @transform_0, window_bounds = array<i64: 2, 1024>}, {transform_indices = @transform_1, window_bounds = array<i64: 2, 1024>}]} {
    %c0 = arith.constant 0 : index
    %0 = memref.load %arg1[%c0] : memref<1xf32, #tpu.memory_space<smem>>
    %1 = vector.broadcast %0 : f32 to vector<1x1xf32>
    %c0_0 = arith.constant 0 : index
    %c0_1 = arith.constant 0 : index
    %2 = vector.load %arg2[%c0_0, %c0_1] : memref<2x1024xf32, #tpu.memory_space<vmem>>, vector<2x1024xf32>
    %3 = vector.broadcast %1 : vector<1x1xf32> to vector<2x1024xf32>
    %4 = arith.mulf %2, %3 : vector<2x1024xf32>
    %5 = math.exp %4 : vector<2x1024xf32>
    %c0_2 = arith.constant 0 : index
    %c0_3 = arith.constant 0 : index
    %6 = vector.load %arg3[%c0_2, %c0_3] : memref<2x1024xf32, #tpu.memory_space<vmem>>, vector<2x1024xf32>
    tpu.vector_store %arg3[%c0_2, %c0_3], %5 {strides = array<i32>} : memref<2x1024xf32, #tpu.memory_space<vmem>>, vector<2x1024xf32>,
    return
  }
  func.func @transform_0(%arg0: i32, %arg1: memref<1xf32, #tpu.memory_space<smem>>) -> (i32, i32) {
    %c0_i32 = arith.constant 0 : i32
    %c0_i32_0 = arith.constant 0 : i32
    return %arg0, %c0_i32 : i32, i32
  }
  func.func @transform_1(%arg0: i32, %arg1: memref<1xf32, #tpu.memory_space<smem>>) -> (i32, i32) {
    %c0_i32 = arith.constant 0 : i32
    %c0_i32_0 = arith.constant 0 : i32
    return %arg0, %c0_i32 : i32, i32
  }
}

</mosaic_0001>

<bundles_post_ra>
// kernel: tpu_custom_call.1
= control target key start
LH: loop header
LB: loop body
LE: loop exit
PB: predicated region body
PF: predicated region fallthrough
CT: control target
= control target key end

     0   :  { %8 = vsyncpa [#allocation5], 0  ;;  %s138_s0 = inlined_call_operand.<no memory space> [shape: f32[1], index: 0, kind: input, shape index: {}]   ;;  %s139_s1 = inlined_call_operand.hbm [shape: f32[2,1024], index: 1, kind: input, shape index: {}]   ;;  %s140_s2 = inlined_call_operand.hbm [shape: f32[2,1024], index: 2, kind: output, shape index: {}]  }
   0x1   :  { %9 = vsyncpa [#allocation6], 0  ;;  %s15_s11 = sshll.u32 %s139_s1, 4  ;;  %s112_s12 = smov [#allocation4]   ;;  %s16_s11 = int_to_ptr.hbm [resolvable:$true] %s15_s11 }
   0x2   :  { %s17_s13 = sshll.u32 %s112_s12, 4  ;;  %s18_s13 = int_to_ptr.vmem [resolvable:$true] %s17_s13 }
   0x3   :  { %20 = dma.hbm_to_vmem [thread:$0]  %s16_s11, 256, %s18_s13, [#allocation5]  }
   0x4   :  { %108 = dma.done.wait [#allocation5], 256  }
   0x5   :  { %109 = vsyncadd [#allocation5], 4294967040  ;;  %v28_v0 = vstv %s138_s0  ;;  %v26_v1 = vld [vmem:[#allocation4] sm:$0xff]  ;;  %v27_v2 = vld [vmem:[#allocation4 + $0x8] sm:$0xff]  ;;  %s113_s1 = smov [#allocation7]   ;;  %s44_s19 = sshll.u32 %s140_s2, 4  ;;  %s45_s19 = int_to_ptr.hbm [resolvable:$true] %s44_s19 }
   0x6   :  { %v29_v3 = vmul.f32 %v28_v0, %v26_v1  ;;  %v30_v4 = vmul.f32 %v28_v0, %v27_v2  ;;  %s42_s16 = sshll.u32 %s113_s1, 4  ;;  %s43_s16 = int_to_ptr.vmem [resolvable:$true] %s42_s16 }
   0x8   :  { %v31_v5 = vmul.f32 1.442695, %v29_v3  ;;  %v33_v6 = vmul.f32 1.442695, %v30_v4 }
   0xa   :  { %56 = vpow2.f32 %v31_v5 }
   0xb   :  { %58 = vpow2.f32 %v33_v6 }
  0x10   :  { %v57_v7 = vpop.eup %56 }
  0x11   :  { %v59_v8 = vpop.eup %58  ;;  %35 = vst [vmem:[#allocation7] sm:$0xff] %v57_v7 }
  0x12   :  { %36 = vst [vmem:[#allocation7 + $0x8] sm:$0xff] %v59_v8 }
  0x13   :  { %47 = dma.vmem_to_hbm [thread:$0]  %s43_s16, 256, %s45_s19, [#allocation6]  }
  0x14   :  { %110 = dma.done.wait [#allocation6], 256  }
  0x15   :  { %111 = vsyncadd [#allocation6], 4294967040 }
  0x16   :  { %52 = vsyncpa [#allocation5], 1 }
  0x17   :  { %53 = vsyncpa [#allocation6], 1 }

</bundles_post_ra>
